<compile_context>
chip_gen: v6e
topology: v6e:2x2x1
jax: 0.10.0
libtpu: 0.0.40
codegen_flags: <defaults>
</compile_context>

<pallas_src>
import math

import jax
import jax.numpy as jnp
from jax.experimental import pallas as pl
from jax.experimental.pallas import tpu as pltpu

# Packed-table slot layout (each feature owns a disjoint 32-row slot):
#   feature column 0 -> month   (size 13) rows [  0,  13)
#   feature column 1 -> day     (size 32) rows [ 32,  64)
#   feature column 2 -> weekday (size  7) rows [ 64,  71)
#   feature column 3 -> hour    (size 24) rows [ 96, 120)
# Rows [128, 256) hold the bf16 low-order residual of the same layout.
_SLOT = 32
_OFFSETS = (0, 1 * _SLOT, 2 * _SLOT, 3 * _SLOT)
_SIZES = (13, 32, 7, 24)
_PACKED_ROWS = 4 * _SLOT            # 128
_TABLE_ROWS = 2 * _PACKED_ROWS      # 256 (hi + lo halves)


def _round_up(x: int, m: int) -> int:
    return ((x + m - 1) // m) * m


def _fixed_embedding_table(c_in: int, d_model: int) -> jnp.ndarray:
    """Replicates FixedEmbedding.__init__ (sinusoidal, non-trainable), f32."""
    position = jnp.arange(c_in, dtype=jnp.float32)[:, None]
    div_term = jnp.exp(
        jnp.arange(0, d_model, 2, dtype=jnp.float32) * -(math.log(10000.0) / d_model)
    )
    w = jnp.zeros((c_in, d_model), dtype=jnp.float32)
    w = w.at[:, 0::2].set(jnp.sin(position * div_term))
    w = w.at[:, 1::2].set(jnp.cos(position * div_term))
    return w


def build_packed_table(d_model: int) -> jnp.ndarray:
    """(256, d_model) bf16: rows [0,128)=bf16(table), rows [128,256)=bf16 residual."""
    t = jnp.zeros((_PACKED_ROWS, d_model), dtype=jnp.float32)
    for off, size in zip(_OFFSETS, _SIZES):
        t = t.at[off: off + size].set(_fixed_embedding_table(size, d_model))
    hi = t.astype(jnp.bfloat16)
    lo = (t - hi.astype(jnp.float32)).astype(jnp.bfloat16)
    return jnp.concatenate([hi, lo], axis=0)


def _temporal_emb_kernel(idx_ref, table_ref, out_ref):
    # idx_ref:   (tile, 4)        int32  (per-feature slot offsets pre-added)
    # table_ref: (256, d_model)   bf16   packed hi/lo sinusoidal tables
    # out_ref:   (tile, d_model)  out dtype
    idx = idx_ref[...]
    tile_n = idx.shape[0]
    k = table_ref.shape[0]                                    # 256
    lane = jax.lax.broadcasted_iota(jnp.int32, (tile_n, k), 1)
    lane_mod = lane & (_PACKED_ROWS - 1)                      # hits hi AND lo halves
    hot = (
        (lane_mod == idx[:, 0:1])
        | (lane_mod == idx[:, 1:2])
        | (lane_mod == idx[:, 2:3])
        | (lane_mod == idx[:, 3:4])
    ).astype(table_ref.dtype)                                 # exact 0/1 in bf16
    # One MXU matmul fuses the 4 gathers + the final sum; f32 accumulation.
    acc = jnp.dot(hot, table_ref[...], preferred_element_type=jnp.float32)
    out_ref[...] = acc.astype(out_ref.dtype)


def temporal_embedding(x_mark, d_model, *, tile_n=4096, out_dtype=jnp.float32):
    """x_mark: [B, L, n_feat>=4] (int or float); returns [B, L, d_model].

    Matches TemporalEmbedding(d_model, embed_type='fixed', freq='h').forward.
    out_dtype=jnp.bfloat16 halves HBM writeback (the kernel is writeback-bound)
    if the downstream TimeMixer stack tolerates it; default keeps f32.
    """
    # TODO(synk): freq='t' (extra minute embedding from x[:, :, 4]) not wired in;
    # the default freq='h' path (minute_x = 0.0) is implemented.
    B, L, n_feat = x_mark.shape
    assert n_feat >= 4, "need month/day/weekday/hour features"
    assert d_model % 2 == 0, "sinusoidal table needs even d_model (as in PyTorch)"
    n = B * L

    out_bytes = jnp.dtype(out_dtype).itemsize
    # Per-row VMEM footprint: double-buffered output block + f32 accumulator
    # + (tile,256) iota / bf16 one-hot intermediates + double-buffered idx block.
    per_row = 2 * d_model * out_bytes + 4 * d_model + 6 * _TABLE_ROWS + 2 * 4 * 4
    budget = 20 << 20                       # keep Pallas buffers ~<= 20 MiB
    cap = max(8, (budget // per_row) // 8 * 8)
    # >= 2 grid steps so both v7x TensorCores get work on the 'parallel' axis.
    two_steps = _round_up(pl.cdiv(n, 2), 8)
    tile = max(8, (min(tile_n, cap, two_steps) // 8) * 8)
    grid = (pl.cdiv(n, tile),)              # partial last block masked on writeback

    # Clamp out-of-range marks (PyTorch would raise an index error), then fold
    # each feature's packed-table slot offset so the kernel only compares.
    idx = x_mark[..., :4].astype(jnp.int32).reshape(n, 4)
    idx = jnp.clip(idx, 0, jnp.asarray([s - 1 for s in _SIZES], dtype=jnp.int32))
    idx = idx + jnp.asarray(_OFFSETS, dtype=jnp.int32)

    table = build_packed_table(d_model)     # (256, d_model) bf16

    cost = pl.CostEstimate(
        flops=2 * n * _TABLE_ROWS * d_model,
        transcendentals=0,
        bytes_accessed=n * 4 * 4 + _TABLE_ROWS * d_model * 2 + n * d_model * out_bytes,
    )

    out = pl.pallas_call(
        _temporal_emb_kernel,
        out_shape=jax.ShapeDtypeStruct((n, d_model), out_dtype),
        grid=grid,
        in_specs=[
            pl.BlockSpec((tile, 4), lambda i: (i, 0)),
            pl.BlockSpec((_TABLE_ROWS, d_model), lambda i: (0, 0)),
        ],
        out_specs=pl.BlockSpec((tile, d_model), lambda i: (i, 0)),
        compiler_params=pltpu.CompilerParams(
            dimension_semantics=("parallel",),
            vmem_limit_bytes=32 * 1024 * 1024,
        ),
        cost_estimate=cost,
    )(idx, table)

    return out.reshape(B, L, d_model)


def _reference(x_mark, d_model):
    """Pure-JAX f32 reference of the PyTorch forward (freq='h', fixed)."""
    idx = x_mark[..., :4].astype(jnp.int32)
    month_w = _fixed_embedding_table(13, d_model)
    day_w = _fixed_embedding_table(32, d_model)
    weekday_w = _fixed_embedding_table(7, d_model)
    hour_w = _fixed_embedding_table(24, d_model)
    return (
        hour_w[idx[..., 3]]
        + weekday_w[idx[..., 2]]
        + day_w[idx[..., 1]]
        + month_w[idx[..., 0]]
    )


if __name__ == "__main__":
    B, L, d_model = 2, 8, 32
    key = jax.random.PRNGKey(0)
    k0, k1, k2, k3 = jax.random.split(key, 4)
    # Time-feature marks: [month(0..12), day(0..31), weekday(0..6), hour(0..23)]
    month = jax.random.randint(k0, (B, L), 0, 13)
    day = jax.random.randint(k1, (B, L), 0, 32)
    weekday = jax.random.randint(k2, (B, L), 0, 7)
    hour = jax.random.randint(k3, (B, L), 0, 24)
    # The module calls x.long() on a float input; mimic that with floats.
    x_mark = jnp.stack([month, day, weekday, hour], axis=-1).astype(jnp.float32)

    ref = _reference(x_mark, d_model)

    # Default f32 output: hi+lo bf16 table split keeps the kernel within ~1e-4
    # of the exact f32 PyTorch values.
    out = jax.block_until_ready(temporal_embedding(x_mark, d_model))
    assert out.shape == (B, L, d_model), out.shape
    assert out.dtype == jnp.float32, out.dtype
    assert jnp.allclose(out, ref, atol=1e-4, rtol=0.0), "f32 output mismatch"

    # Optional bf16 output (halves HBM writeback on this writeback-bound
    # kernel); only the final cast loses precision.
    out_bf16 = jax.block_until_ready(
        temporal_embedding(x_mark, d_model, out_dtype=jnp.bfloat16)
    )
    assert jnp.allclose(out_bf16.astype(jnp.float32), ref, atol=2e-2, rtol=0.0), \
        "bf16 output mismatch"

    print("KERNEL_OK")
</pallas_src>

<mosaic_0001>
module attributes {stable_mosaic.version = 11 : i64} {
  func.func @_temporal_emb_kernel(%arg0: i32, %arg1: memref<8x4xi32, #tpu.memory_space<vmem>>, %arg2: memref<256x32xbf16, #tpu.memory_space<vmem>>, %arg3: memref<8x32xf32, #tpu.memory_space<vmem>>) attributes {dimension_semantics = [#tpu.dimension_semantics<parallel>], iteration_bounds = array<i64: 2>, scalar_prefetch = 0 : i64, scratch_operands = 0 : i64, tpu.core_type = #tpu.core_type<tc>, window_params = [{transform_indices = @transform_0, window_bounds = array<i64: 8, 4>}, {pipeline_mode = #tpu.pipeline_mode<synchronous>, transform_indices = @transform_1, window_bounds = array<i64: 256, 32>}, {transform_indices = @transform_2, window_bounds = array<i64: 8, 32>}]} {
    %c0 = arith.constant 0 : index
    %c0_0 = arith.constant 0 : index
    %0 = vector.load %arg1[%c0, %c0_0] : memref<8x4xi32, #tpu.memory_space<vmem>>, vector<8x4xi32>
    %1 = tpu.iota {dimensions = array<i32: 1>} : vector<8x256xi32>
    %c127_i32 = arith.constant 127 : i32
    %2 = vector.broadcast %c127_i32 : i32 to vector<8x256xi32>
    %3 = arith.andi %1, %2 : vector<8x256xi32>
    %4 = vector.extract_strided_slice %0 {offsets = [0, 0], sizes = [8, 1], strides = [1, 1]} : vector<8x4xi32> to vector<8x1xi32>
    %5 = vector.broadcast %4 : vector<8x1xi32> to vector<8x256xi32>
    %6 = arith.cmpi eq, %3, %5 : vector<8x256xi32>
    %7 = vector.extract_strided_slice %0 {offsets = [0, 1], sizes = [8, 1], strides = [1, 1]} : vector<8x4xi32> to vector<8x1xi32>
    %8 = vector.broadcast %7 : vector<8x1xi32> to vector<8x256xi32>
    %9 = arith.cmpi eq, %3, %8 : vector<8x256xi32>
    %10 = arith.ori %6, %9 : vector<8x256xi1>
    %11 = vector.extract_strided_slice %0 {offsets = [0, 2], sizes = [8, 1], strides = [1, 1]} : vector<8x4xi32> to vector<8x1xi32>
    %12 = vector.broadcast %11 : vector<8x1xi32> to vector<8x256xi32>
    %13 = arith.cmpi eq, %3, %12 : vector<8x256xi32>
    %14 = arith.ori %10, %13 : vector<8x256xi1>
    %15 = vector.extract_strided_slice %0 {offsets = [0, 3], sizes = [8, 1], strides = [1, 1]} : vector<8x4xi32> to vector<8x1xi32>
    %16 = vector.broadcast %15 : vector<8x1xi32> to vector<8x256xi32>
    %17 = arith.cmpi eq, %3, %16 : vector<8x256xi32>
    %18 = arith.ori %14, %17 : vector<8x256xi1>
    %19 = arith.extui %18 : vector<8x256xi1> to vector<8x256xi32>
    %20 = arith.sitofp %19 : vector<8x256xi32> to vector<8x256xf32>
    %21 = arith.truncf %20 : vector<8x256xf32> to vector<8x256xbf16>
    %c0_1 = arith.constant 0 : index
    %c0_2 = arith.constant 0 : index
    %22 = vector.load %arg2[%c0_1, %c0_2] : memref<256x32xbf16, #tpu.memory_space<vmem>>, vector<256x32xbf16>
    %cst = arith.constant dense<0.000000e+00> : vector<8x32xf32>
    %23 = tpu.matmul %21, %22, %cst {dimension_numbers = #tpu.dot_dimension_numbers<[1], [0], [0], [1], [0, 0, 1, 1], [], []>} : vector<8x256xbf16>, vector<256x32xbf16>, vector<8x32xf32> -> vector<8x32xf32>
    %c0_3 = arith.constant 0 : index
    %c0_4 = arith.constant 0 : index
    %24 = vector.load %arg3[%c0_3, %c0_4] : memref<8x32xf32, #tpu.memory_space<vmem>>, vector<8x32xf32>
    tpu.vector_store %arg3[%c0_3, %c0_4], %23 {strides = array<i32>} : memref<8x32xf32, #tpu.memory_space<vmem>>, vector<8x32xf32>,
    return
  }
  func.func @transform_0(%arg0: i32) -> (i32, i32) {
    %c0_i32 = arith.constant 0 : i32
    %c0_i32_0 = arith.constant 0 : i32
    return %arg0, %c0_i32 : i32, i32
  }
  func.func @transform_1(%arg0: i32) -> (i32, i32) {
    %c0_i32 = arith.constant 0 : i32
    %c0_i32_0 = arith.constant 0 : i32
    %c0_i32_1 = arith.constant 0 : i32
    return %c0_i32, %c0_i32_0 : i32, i32
  }
  func.func @transform_2(%arg0: i32) -> (i32, i32) {
    %c0_i32 = arith.constant 0 : i32
    %c0_i32_0 = arith.constant 0 : i32
    return %arg0, %c0_i32 : i32, i32
  }
}

</mosaic_0001>

<bundles_post_ra>
// kernel: tpu_custom_call.1
= control target key start
LH: loop header
LB: loop body
LE: loop exit
PB: predicated region body
PF: predicated region fallthrough
CT: control target
= control target key end

     0   :  { %7 = vsyncpa [#allocation3], 0  ;;  %s770_s0 = inlined_call_operand.vmem [shape: s32[16,4], index: 0, kind: input, shape index: {}]   ;;  %s771_s1 = inlined_call_operand.vmem [shape: bf16[256,32], index: 1, kind: input, shape index: {}]   ;;  %s772_s2 = inlined_call_operand.hbm [shape: f32[16,32], index: 2, kind: output, shape index: {}]  }
   0x1   :  { %9 = vsyncpa [#allocation3 + $0x1], 0  ;;  %s623_s9 = smov 0   ;;  %s625_s10 = smov 0  }
   0x2   :  { %s627_s11 = smov 0   ;;  %s629_s12 = smov 0  }
   0x3 LB: > { %s644_s13 = sadd.s32 4294967295, %s600_s12   ;;  %s421_s14 = sadd.s32 4294967294, %s600_s12   ;;  %s600_s12 = sphi %s629_s12, %s778_s12   ;;  %s596_s11 = sphi %s627_s11, %s777_s11   ;;  %s592_s10 = sphi %s625_s10, %s776_s10   ;;  %s588_s9 = sphi %s623_s9, %s775_s9  }
   0x4   : > { %s648_s15 = sadd.s32 1, %s600_s12   ;;  %s69_s16 = sadd.s32 1, %s596_s11 }
   0x5   : > { %s66_s17 = ssub.s32 %s600_s12, %s648_s15  ;;  %p79_p0 = scmp.ne.s32.totalorder %s596_s11, %s592_s10 }
   0x6   : > { %p67_p1 = scmp.eq.s32.totalorder %s66_s17, 0  ;;  %p80_p2 = scmp.eq.s32.totalorder %s644_s13, 1 }
   0x7   : > { %p85_p3 = scmp.ne.s32.totalorder %s592_s10, %s588_s9  ;;  %p86_p4 = scmp.eq.s32.totalorder %s421_s14, 1 }
   0x8   : > { %s659_s18 = scalar_select %p67_p1, %s596_s11, %s69_s16  }
   0x9   : > { %p661_p5 = por %p80_p2, %p79_p0  ;;  %p665_p6 = por %p86_p4, %p85_p3 }
   0xa   : > { %p424_p7 = scmp.ge.s32.totalorder %s600_s12, 1  ;;  %p114_p8 = scmp.lt.s32.totalorder %s600_s12, 3 }
   0xc   : > { %p115_p9 = pnand %p424_p7, %p114_p8 }
   0xd   : > { %p135_p10 = scmp.lt.s32.totalorder (!%p115_p9), %s644_s13, 1  ;;  %s132_s17 = sand.u32 (!%p115_p9), 1, %s592_s10  }
   0xe   : > { %118 = sbr.rel (%p115_p9) target bundleno = 374 (0x176), region = 28  ;;  %s425_s21 = sshll.u32 (!%p115_p9), %s132_s17, 3 }
   0xf   : > { %s450_s22 = sshll.u32 (!%p115_p9), %s644_s13, 7  ;;  %s607_s29 = smov (!%p115_p9), [#allocation2]  }
  0x10   : > { %s729_s27 = scalar_lea.hbm (!%p115_p9), %s772_s2, %s450_s22  ;;  %s544_s30 = sshll.u32 (!%p115_p9), %s607_s29, 4  ;;  %s545_s30 = int_to_ptr.vmem [resolvable:$false] %s544_s30 }
  0x11   : > { %s546_s3 = scalar_lea.vmem (!%p115_p9), %s545_s30, 256 }
  0x13   : > { %v524_v0 = vld [vmem:[%s771_s1 + $0x78] sm:$0xff]   ;;  %v602_v1 = vmov 0   ;;  %v603_v2 = vmov 2   ;;  %s136_s23 = scalar_select %p135_p10, %s644_s13, 1  ;;  %v526_v4 = vld [vmem:[%s771_s1 + $0x70] sm:$0xff]   ;;  %v528_v6 = vld [vmem:[%s771_s1 + $0x68] sm:$0xff]   ;;  %v141_v21 = vlaneseq }
  0x14   : > { %519 = vset.pattern.permute.xlu0 %v602_v1  ;;  %521 = vset.pattern.permute.xlu1 %v603_v2  ;;  %v525_v3 = vld [vmem:[%s771_s1 + $0x38] sm:$0xff]   ;;  %v527_v5 = vld [vmem:[%s771_s1 + $0x30] sm:$0xff]   ;;  %v529_v8 = vld [vmem:[%s771_s1 + $0x28] sm:$0xff]   ;;  %v604_v10 = vmov 1   ;;  %v605_v11 = vmov 3  }
  0x15   : > { %453 = vmatprep.subr.bf16.mxu0 %v524_v0  ;;  %s426_s28 = sshll.u32 %s136_s23, 3  ;;  %v530_v9 = vld [vmem:[%s771_s1 + $0x60] sm:$0xff]   ;;  %v532_v13 = vld [vmem:[%s771_s1 + $0x58] sm:$0xff]   ;;  %v534_v15 = vld [vmem:[%s771_s1 + $0x50] sm:$0xff]   ;;  %v142_v22 = vand.u32 127, %v141_v21  ;;  %s134_s23 = scalar_lea.vmem [#allocation2], %s425_s21 }
  0x16   : > { %454 = vmatpush3.bf16.msra.mxu0 %v525_v3  ;;  %s138_s5 = scalar_lea.vmem %s770_s0, %s426_s28  ;;  %v531_v12 = vld [vmem:[%s771_s1 + $0x20] sm:$0xff]   ;;  %v533_v14 = vld [vmem:[%s771_s1 + $0x18] sm:$0xff]   ;;  %v535_v16 = vld [vmem:[%s771_s1 + $0x10] sm:$0xff]   ;;  %v606_v29 = vmov 1.0|1.0   ;;  %s362_s24 = sshll.u32 %s134_s23, 4  ;;  %s731_s24 = int_to_ptr.vmem [resolvable:$true] %s362_s24 }
  0x17   : > { %455 = vmatprep.subr.bf16.mxu0 %v526_v4  ;;  %v140_v7 = vld [vmem:[%s138_s5] sm:$0xff]  ;;  %v536_v17 = vld [vmem:[%s771_s1 + $0x48] sm:$0xff]   ;;  %v143_v23 = vadd.s32 128, %v142_v22  ;;  %s349_s28 = scalar_lea.sflag [#allocation3], %s132_s17  ;;  %s540_s13 = scalar_lea.vmem %s731_s24, 128 }
  0x18   : > { %147 = vperm.xlu0 %519, %v140_v7   ;;  %159 = vperm.xlu1 %521, %v140_v7   ;;  %v537_v18 = vld [vmem:[%s771_s1 + $0x8] sm:$0xff]   ;;  %v538_v19 = vld [vmem:[%s771_s1 + $0x40] sm:$0xff]   ;;  %p541_p11 = scmp.ne.s32.totalorder %s731_s24, %s540_s13  ;;  %p547_p0 = scmp.lt.s32.totalorder %s731_s24, %s545_s30 }
  0x19   : > { %v539_v20 = vld [vmem:[%s771_s1] sm:$0xff]   ;;  %v145_v26 = vand.u32 127, %v143_v23  ;;  %p548_p1 = scmp.lt.s32.totalorder %s546_s3, %s540_s13 }
  0x1a   : > { %456 = vmatpush3.bf16.msra.mxu0 %v527_v5  ;;  %p542_p12 = pnand %p541_p11, %p661_p5 }
  0x1b   : > { %457 = vmatprep.subr.bf16.mxu0 %v528_v6  ;;  %p549_p2 = por %p548_p1, %p547_p0 }
  0x1c   : > { %520 = vset.pattern.permute.xlu0 %v604_v10  ;;  %522 = vset.pattern.permute.xlu1 %v605_v11  ;;  %p543_p13 = pneg %p542_p12 }
  0x1d   : > { %152 = vperm.xlu0 %520, %v140_v7   ;;  %166 = vperm.xlu1 %522, %v140_v7  }
  0x1e   : > { %458 = vmatpush3.bf16.msra.mxu0 %v529_v8  ;;  %p550_p3 = pnand %p549_p2, %p543_p13 }
  0x1f   : > { %459 = vmatprep.subr.bf16.mxu0 %v530_v9 }
  0x21   : > { %523 = vset.pattern.permute.xlu0 %v605_v11 }
  0x22   : > { %460 = vmatpush3.bf16.msra.mxu0 %v531_v12 }
  0x23   : > { %461 = vmatprep.subr.bf16.mxu0 %v532_v13 }
  0x26   : > { %462 = vmatpush3.bf16.msra.mxu0 %v533_v14 }
  0x27   : > { %463 = vmatprep.subr.bf16.mxu0 %v534_v15 }
  0x2a   : > { %464 = vmatpush3.bf16.msra.mxu0 %v535_v16 }
  0x2b   : > { %465 = vmatprep.subr.bf16.mxu0 %v536_v17 }
  0x2e   : > { %466 = vmatpush3.bf16.msra.mxu0 %v537_v18 }
  0x2f   : > { %467 = vmatprep.subr.bf16.mxu0 %v538_v19 }
  0x32   : > { %468 = vmatpush3.bf16.msra.mxu0 %v539_v20 }
  0x93   : > { %v148_v24 = vpop.permute.xlu0 %147  ;;  %v160_v25 = vpop.permute.xlu1 %159 }
  0x94   : > { %vm149_vm0 = vcmp.eq.s32.totalorder %v142_v22, %v148_v24  ;;  %vm150_vm3 = vcmp.eq.s32.totalorder %v145_v26, %v148_v24  ;;  %vm161_vm6 = vcmp.eq.s32.totalorder %v142_v22, %v160_v25  ;;  %vm162_vm11 = vcmp.eq.s32.totalorder %v145_v26, %v160_v25 }
  0x98   : > { %v153_v27 = vpop.permute.xlu0 %152  ;;  %v167_v28 = vpop.permute.xlu1 %166 }
  0x99   : > { %vm154_vm1 = vcmp.eq.s32.totalorder %v142_v22, %v153_v27  ;;  %vm155_vm2 = vcmp.eq.s32.totalorder %v145_v26, %v153_v27  ;;  %vm168_vm5 = vcmp.eq.s32.totalorder %v142_v22, %v167_v28  ;;  %vm169_vm9 = vcmp.eq.s32.totalorder %v145_v26, %v167_v28 }
  0x9a   : > { %vm156_vm4 = vmor %vm149_vm0, %vm154_vm1  ;;  %vm346_vm0 = vcmask 261120  }
  0x9b   : > { %vm157_vm7 = vmor %vm150_vm3, %vm155_vm2 }
  0x9c   : > { %vm163_vm8 = vmor %vm156_vm4, %vm161_vm6 }
  0x9d   : > { %vm170_vm10 = vmor %vm163_vm8, %vm168_vm5 }
  0x9e   : > { %vm447_vm12 = vmpackc.low %vm170_vm10, %vm170_vm10 }
  0x9f   : > { %vm164_vm13 = vmor %vm157_vm7, %vm162_vm11 }
  0xa0   : > { %vm171_vm14 = vmor %vm164_vm13, %vm169_vm9 }
  0xa1   : > { %vm445_vm15 = vmpackc.low %vm171_vm14, %vm171_vm14 }
  0xa2   : > { %446 = vmatprep.mubr.msk.bf16.mxu0 %vm445_vm15, %v606_v29 }
  0xa3   : > { %448 = vmatmul.mubr.msk.bf16.vlgmr.msra.gmra.mxu0 %vm447_vm12, %v606_v29 }
 0x163   : > { %v469_v30 = vpop.f32.mrf.mxu0 }
 0x165   : > { %v470_v31 = vpop.f32.mrf.mxu0 }
 0x166   : > { %v471_v32 = vadd.f32 %v470_v31, %v469_v30 }
 0x167   : > { %v472_v33 = vpop.f32.mrf.mxu0 }
 0x168   : > { %347 = vst.msk [vmem:[%s134_s23] sm:$0xff] %vm346_vm0, %v471_v32 }
 0x169   : > { %v473_v34 = vpop.f32.mrf.mxu0 }
 0x16a   : > { %553 = shalt.err (!%p550_p3)
}
 0x16b   : > { %s554_s4 = scalar_lea.hbm %s729_s27, 128  ;;  %s558_s7 = scalar_lea.hbm %s772_s2, 256 }
 0x16c   : > { %p555_p4 = scmp.ne.s32.totalorder %s729_s27, %s554_s4  ;;  %p559_p9 = scmp.lt.s32.totalorder %s729_s27, %s772_s2 }
 0x16d   : > { %p560_p10 = scmp.lt.s32.totalorder %s558_s7, %s554_s4 }
 0x16e   : > { %p556_p7 = pnand %p555_p4, %p661_p5 }
 0x16f   : > { %p561_p11 = por %p560_p10, %p559_p9 }
 0x170   : > { %p557_p8 = pneg %p556_p7 }
 0x172   : > { %p562_p12 = pnand %p561_p11, %p557_p8 }
 0x174   : > { %565 = shalt.err (!%p562_p12)
}
 0x175   : > { %475 = dma.vmem_to_hbm [thread:$0]  (%p661_p5), %s731_s24, 128, %s729_s27, %s349_s28  }
 0x176 PF: > { %p481_p13 = scmp.ge.s32.totalorder %s600_s12, 2  ;;  %s374_s16 = sand.u32 1, %s588_s9  }
 0x177   : > { %s375_s17 = scalar_lea.sflag [#allocation3], %s374_s16 }
 0x178   : > { %p478_p0 = pnand %p481_p13, %p665_p6 }
 0x17a   : > { %p479_p1 = pneg %p478_p0 }
 0x17c   : > { %583 = dma.done.wait (%p479_p1), %s375_s17, 128  }
 0x17d   : > { %585 = vsyncadd (%p479_p1), %s375_s17, 4294967168  ;;  %p12_p2 = scmp.ge.s32.totalorder %s648_s15, 4   ;;  %s775_s9 = smov %s592_s10 }
 0x17e   : > { %s776_s10 = smov %s596_s11  ;;  %s777_s11 = smov %s659_s18 }
 0x17f   : > { %s778_s12 = smov %s648_s15  ;;  %14 = sbr.rel (!%p12_p2) target bundleno = 3 (0x3), region = 63 }
 0x184   :  { %380 = vsyncpa [#allocation3], 1 }
 0x185   :  { %382 = vsyncpa [#allocation3 + $0x1], 1 }

</bundles_post_ra>
